<compile_context>
chip_gen: v6e
topology: v6e:2x2x1
jax: 0.10.0
libtpu: 0.0.40
codegen_flags: <defaults>
</compile_context>

<pallas_src>
import functools

import jax
import jax.numpy as jnp
from jax.experimental import pallas as pl
from jax.experimental.pallas import tpu as pltpu

BN_EPS = 0.001  # nn.BatchNorm1d(..., eps=0.001)


def _round_up(x, m):
    return (x + m - 1) // m * m


def _decoder_kernel(act_type, n_valid, n_padded,
                    z_ref, w1_ref, b1_ref, w2_ref, b2_ref, out_ref):
    # Hidden layer: (Linear + folded eval-mode BatchNorm) -> ReLU.
    # Dropout(p=0.1) is identity at inference time.
    h = jnp.dot(z_ref[...], w1_ref[...], preferred_element_type=jnp.float32)
    h = jnp.maximum(h + b1_ref[...], 0.0)

    # Output projection: decoder_x = Linear(hidden, input_size[_padded]).
    y = jnp.dot(h.astype(w2_ref.dtype), w2_ref[...],
                preferred_element_type=jnp.float32) + b2_ref[...]

    if act_type in ("Bernoulli", "Gaussian1"):
        out = jax.nn.sigmoid(y)
    elif act_type == "Gaussian":
        # F.softmax(recon_x, dim=1); exclude the lane padding from the sum.
        if n_valid < n_padded:
            col = jax.lax.broadcasted_iota(jnp.int32, y.shape, 1)
            y = jnp.where(col < n_valid, y, -jnp.inf)
        m = jnp.max(y, axis=-1, keepdims=True)
        e = jnp.exp(y - m)
        out = e * pl.reciprocal(jnp.sum(e, axis=-1, keepdims=True), approx=True)
    else:
        out = jnp.maximum(y, 0.0)
    out_ref[...] = out.astype(out_ref.dtype)


def prepare_params(params, io_dtype=jnp.bfloat16):
    """One-time parameter prep (do NOT repeat per forward call):
    fold eval-mode BN into Linear1, pad output features to a lane-dense
    multiple of 128, reshape biases to (1, n) rows, cast weights to the
    HBM I/O dtype.  Returns (prepped_params, true_output_size)."""
    w1, b1, gamma, beta, mean, var, w2, b2 = params
    scale = gamma * jax.lax.rsqrt(var + BN_EPS)
    w1f = (w1 * scale[None, :]).astype(io_dtype)
    b1f = ((b1 - mean) * scale + beta).reshape(1, -1).astype(jnp.float32)

    n = w2.shape[1]
    n_pad = _round_up(n, 128)
    w2p = jnp.pad(w2, ((0, 0), (0, n_pad - n))).astype(io_dtype)
    b2p = jnp.pad(b2, (0, n_pad - n)).reshape(1, -1).astype(jnp.float32)
    return (w1f, b1f, w2p, b2p), n


def decoder_forward(z, prepped, n_valid, act_type="Bernoulli", *,
                    tm=2048, io_dtype=jnp.bfloat16, out_dtype=None):
    """Fused Decoder forward.  z: (B, latent).  Returns (B, n_valid)."""
    w1f, b1f, w2p, b2p = prepped
    if out_dtype is None:
        out_dtype = io_dtype

    batch, latent = z.shape
    hidden = w1f.shape[1]
    n_pad = w2p.shape[1]

    # Batch tiling: TM rows per grid step (multiple of 8); pad the tail rows.
    tm_eff = min(tm, _round_up(batch, 8))
    b_pad = _round_up(batch, tm_eff)
    z_p = z.astype(io_dtype)
    if b_pad != batch:
        z_p = jnp.pad(z_p, ((0, b_pad - batch), (0, 0)))

    kernel = functools.partial(_decoder_kernel, act_type, n_valid, n_pad)
    resident = lambda shape: pl.BlockSpec(shape, lambda i: (0, 0))

    out = pl.pallas_call(
        kernel,
        out_shape=jax.ShapeDtypeStruct((b_pad, n_pad), out_dtype),
        grid=(b_pad // tm_eff,),
        in_specs=[
            pl.BlockSpec((tm_eff, latent), lambda i: (i, 0)),  # z: row tiles
            resident((latent, hidden)),                        # w1 (BN folded)
            resident((1, hidden)),                             # b1 (BN folded)
            resident((hidden, n_pad)),                         # w2 (lane-padded)
            resident((1, n_pad)),                              # b2 (lane-padded)
        ],
        out_specs=pl.BlockSpec((tm_eff, n_pad), lambda i: (i, 0)),
        compiler_params=pltpu.CompilerParams(
            dimension_semantics=("parallel",)),
    )(z_p, w1f, b1f, w2p, b2p)

    return out[:batch, :n_valid]


def init_params(key, latent_dim, hidden, input_size):
    """Deterministic parameter init mirroring Decoder.__init__ shapes."""
    k1, k2, k3, k4, k5, k6 = jax.random.split(key, 6)
    w1 = jax.random.normal(k1, (latent_dim, hidden), jnp.float32) * 0.1
    b1 = jax.random.normal(k2, (hidden,), jnp.float32) * 0.1
    gamma = jnp.ones((hidden,), jnp.float32) + 0.05 * jax.random.normal(k3, (hidden,))
    beta = 0.05 * jax.random.normal(k4, (hidden,))
    mean = jnp.zeros((hidden,), jnp.float32)      # BN running_mean init
    var = jnp.ones((hidden,), jnp.float32)        # BN running_var init
    w2 = jax.random.normal(k5, (hidden, input_size), jnp.float32) * 0.1
    b2 = jax.random.normal(k6, (input_size,), jnp.float32) * 0.1
    return (w1, b1, gamma, beta, mean, var, w2, b2)


def decoder_reference(z, params, act_type="Bernoulli"):
    """Pure-JAX reference for correctness checking."""
    w1, b1, gamma, beta, mean, var, w2, b2 = params
    h = z @ w1 + b1
    h = (h - mean) / jnp.sqrt(var + BN_EPS) * gamma + beta
    h = jnp.maximum(h, 0.0)
    y = h @ w2 + b2
    if act_type in ("Bernoulli", "Gaussian1"):
        return jax.nn.sigmoid(y)
    if act_type == "Gaussian":
        return jax.nn.softmax(y, axis=1)
    return jnp.maximum(y, 0.0)


if __name__ == "__main__":
    # Decoder(layer=[16, 32], hidden=32, input_size=64, Type='Bernoulli')
    latent_dim, hidden, input_size = 16, 32, 64
    batch = 8

    key = jax.random.PRNGKey(0)
    kz, kp = jax.random.split(key)
    z = jax.random.normal(kz, (batch, latent_dim), jnp.float32)
    params = init_params(kp, latent_dim, hidden, input_size)
    ref = decoder_reference(z, params, act_type="Bernoulli")

    # Exact-dtype run (f32 I/O): validates fused Linear+BN+ReLU+Linear+sigmoid.
    prep32, n_out = prepare_params(params, io_dtype=jnp.float32)
    out32 = jax.block_until_ready(
        decoder_forward(z, prep32, n_out, act_type="Bernoulli",
                        io_dtype=jnp.float32))
    assert out32.shape == (batch, input_size)
    assert jnp.allclose(out32, ref, atol=1e-5, rtol=1e-5), "f32 mismatch vs reference"

    # Performance configuration: bf16 HBM I/O, f32 accumulation in-kernel.
    prep16, n_out = prepare_params(params, io_dtype=jnp.bfloat16)
    out16 = jax.block_until_ready(
        decoder_forward(z, prep16, n_out, act_type="Bernoulli"))
    assert out16.shape == (batch, input_size)
    assert jnp.allclose(out16.astype(jnp.float32), ref, atol=2e-2, rtol=2e-2), \
        "bf16 mismatch vs reference"

    print("KERNEL_OK")
</pallas_src>

<mosaic_0001>
module attributes {stable_mosaic.version = 11 : i64} {
  func.func @_decoder_kernel(%arg0: i32, %arg1: memref<8x16xf32, #tpu.memory_space<vmem>>, %arg2: memref<16x32xf32, #tpu.memory_space<vmem>>, %arg3: memref<1x32xf32, #tpu.memory_space<vmem>>, %arg4: memref<32x128xf32, #tpu.memory_space<vmem>>, %arg5: memref<1x128xf32, #tpu.memory_space<vmem>>, %arg6: memref<8x128xf32, #tpu.memory_space<vmem>>) attributes {dimension_semantics = [#tpu.dimension_semantics<parallel>], iteration_bounds = array<i64: 1>, scalar_prefetch = 0 : i64, scratch_operands = 0 : i64, tpu.core_type = #tpu.core_type<tc>, window_params = [{transform_indices = @transform_0, window_bounds = array<i64: 8, 16>}, {pipeline_mode = #tpu.pipeline_mode<synchronous>, transform_indices = @transform_1, window_bounds = array<i64: 16, 32>}, {pipeline_mode = #tpu.pipeline_mode<synchronous>, transform_indices = @transform_2, window_bounds = array<i64: 1, 32>}, {pipeline_mode = #tpu.pipeline_mode<synchronous>, transform_indices = @transform_3, window_bounds = array<i64: 32, 128>}, {pipeline_mode = #tpu.pipeline_mode<synchronous>, transform_indices = @transform_4, window_bounds = array<i64: 1, 128>}, {transform_indices = @transform_5, window_bounds = array<i64: 8, 128>}]} {
    %c0 = arith.constant 0 : index
    %c0_0 = arith.constant 0 : index
    %0 = vector.load %arg1[%c0, %c0_0] : memref<8x16xf32, #tpu.memory_space<vmem>>, vector<8x16xf32>
    %c0_1 = arith.constant 0 : index
    %c0_2 = arith.constant 0 : index
    %1 = vector.load %arg2[%c0_1, %c0_2] : memref<16x32xf32, #tpu.memory_space<vmem>>, vector<16x32xf32>
    %cst = arith.constant dense<0.000000e+00> : vector<8x32xf32>
    %2 = tpu.matmul %0, %1, %cst {dimension_numbers = #tpu.dot_dimension_numbers<[1], [0], [0], [1], [0, 0, 1, 1], [], []>} : vector<8x16xf32>, vector<16x32xf32>, vector<8x32xf32> -> vector<8x32xf32>
    %c0_3 = arith.constant 0 : index
    %c0_4 = arith.constant 0 : index
    %3 = vector.load %arg3[%c0_3, %c0_4] : memref<1x32xf32, #tpu.memory_space<vmem>>, vector<1x32xf32>
    %4 = vector.broadcast %3 : vector<1x32xf32> to vector<8x32xf32>
    %5 = arith.addf %2, %4 : vector<8x32xf32>
    %cst_5 = arith.constant 0.000000e+00 : f32
    %6 = vector.broadcast %cst_5 : f32 to vector<8x32xf32>
    %7 = arith.maximumf %5, %6 : vector<8x32xf32>
    %c0_6 = arith.constant 0 : index
    %c0_7 = arith.constant 0 : index
    %8 = vector.load %arg4[%c0_6, %c0_7] : memref<32x128xf32, #tpu.memory_space<vmem>>, vector<32x128xf32>
    %cst_8 = arith.constant dense<0.000000e+00> : vector<8x128xf32>
    %9 = tpu.matmul %7, %8, %cst_8 {dimension_numbers = #tpu.dot_dimension_numbers<[1], [0], [0], [1], [0, 0, 1, 1], [], []>} : vector<8x32xf32>, vector<32x128xf32>, vector<8x128xf32> -> vector<8x128xf32>
    %c0_9 = arith.constant 0 : index
    %c0_10 = arith.constant 0 : index
    %10 = vector.load %arg5[%c0_9, %c0_10] : memref<1x128xf32, #tpu.memory_space<vmem>>, vector<1x128xf32>
    %11 = vector.broadcast %10 : vector<1x128xf32> to vector<8x128xf32>
    %12 = arith.addf %9, %11 : vector<8x128xf32>
    %13 = arith.negf %12 : vector<8x128xf32>
    %14 = math.exp %13 : vector<8x128xf32>
    %cst_11 = arith.constant 1.000000e+00 : f32
    %15 = vector.broadcast %cst_11 : f32 to vector<8x128xf32>
    %16 = arith.addf %15, %14 : vector<8x128xf32>
    %17 = arith.divf %15, %16 : vector<8x128xf32>
    %c0_12 = arith.constant 0 : index
    %c0_13 = arith.constant 0 : index
    %18 = vector.load %arg6[%c0_12, %c0_13] : memref<8x128xf32, #tpu.memory_space<vmem>>, vector<8x128xf32>
    tpu.vector_store %arg6[%c0_12, %c0_13], %17 {strides = array<i32>} : memref<8x128xf32, #tpu.memory_space<vmem>>, vector<8x128xf32>,
    return
  }
  func.func @transform_0(%arg0: i32) -> (i32, i32) {
    %c0_i32 = arith.constant 0 : i32
    %c0_i32_0 = arith.constant 0 : i32
    return %arg0, %c0_i32 : i32, i32
  }
  func.func @transform_1(%arg0: i32) -> (i32, i32) {
    %c0_i32 = arith.constant 0 : i32
    %c0_i32_0 = arith.constant 0 : i32
    %c0_i32_1 = arith.constant 0 : i32
    return %c0_i32, %c0_i32_0 : i32, i32
  }
  func.func @transform_2(%arg0: i32) -> (i32, i32) {
    %c0_i32 = arith.constant 0 : i32
    %c0_i32_0 = arith.constant 0 : i32
    %c0_i32_1 = arith.constant 0 : i32
    return %c0_i32, %c0_i32_0 : i32, i32
  }
  func.func @transform_3(%arg0: i32) -> (i32, i32) {
    %c0_i32 = arith.constant 0 : i32
    %c0_i32_0 = arith.constant 0 : i32
    %c0_i32_1 = arith.constant 0 : i32
    return %c0_i32, %c0_i32_0 : i32, i32
  }
  func.func @transform_4(%arg0: i32) -> (i32, i32) {
    %c0_i32 = arith.constant 0 : i32
    %c0_i32_0 = arith.constant 0 : i32
    %c0_i32_1 = arith.constant 0 : i32
    return %c0_i32, %c0_i32_0 : i32, i32
  }
  func.func @transform_5(%arg0: i32) -> (i32, i32) {
    %c0_i32 = arith.constant 0 : i32
    %c0_i32_0 = arith.constant 0 : i32
    return %arg0, %c0_i32 : i32, i32
  }
}

</mosaic_0001>

<bundles_post_ra>
// kernel: tpu_custom_call.1
= control target key start
LH: loop header
LB: loop body
LE: loop exit
PB: predicated region body
PF: predicated region fallthrough
CT: control target
= control target key end

     0   :  { %10 = vsyncpa [#allocation3], 0  ;;  %s438_s0 = inlined_call_operand.hbm [shape: f32[8,16], index: 0, kind: input, shape index: {}]   ;;  %s439_s1 = inlined_call_operand.hbm [shape: f32[16,32], index: 1, kind: input, shape index: {}]   ;;  %s440_s2 = inlined_call_operand.vmem [shape: f32[1,32], index: 2, kind: input, shape index: {}]   ;;  %s441_s3 = inlined_call_operand.hbm [shape: f32[32,128], index: 3, kind: input, shape index: {}]   ;;  %s442_s4 = inlined_call_operand.vmem [shape: f32[1,128], index: 4, kind: input, shape index: {}]   ;;  %s443_s5 = inlined_call_operand.hbm [shape: f32[8,128], index: 5, kind: output, shape index: {}]  }
   0x1   :  { %11 = vsyncpa [#allocation6], 0 }
   0x2   :  { %12 = vsyncpa [#allocation4], 0  ;;  %s382_s18 = smov [#allocation5]  }
   0x3   :  { %s28_s19 = sshll.u32 %s382_s18, 4  ;;  %s29_s19 = int_to_ptr.vmem [resolvable:$true] %s28_s19 }
   0x4   :  { %s304_s20 = scalar_lea.vmem %s29_s19, 256  ;;  %p309_p1 = scmp.lt.s32.totalorder %s29_s19, %s29_s19 }
   0x5   :  { %p305_p0 = scmp.ne.s32.totalorder %s29_s19, %s304_s20  ;;  %p310_p2 = scmp.lt.s32.totalorder %s304_s20, %s304_s20 }
   0x7   :  { %p311_p3 = por %p310_p2, %p309_p1 }
   0x9   :  { %p312_p4 = pnand %p311_p3, %p305_p0 }
   0xb   :  { %315 = shalt.err (!%p312_p4)
}
   0xc   :  { %s383_s21 = smov 128   ;;  %s384_s22 = smov 8  }
   0xd   :  { %34 = dma.hbm_to_vmem [thread:$0]  %s439_s1, 256, %s29_s19, [#allocation6], %s383_s21, %s383_s21, %s384_s22  }
   0xe   :  { %s385_s25 = smov [#allocation2]   ;;  %s386_s27 = smov [#allocation7]  }
   0xf   :  { %s19_s26 = sshll.u32 %s385_s25, 4  ;;  %s42_s28 = sshll.u32 %s386_s27, 4  ;;  %s20_s26 = int_to_ptr.vmem [resolvable:$true] %s19_s26  ;;  %s43_s28 = int_to_ptr.vmem [resolvable:$true] %s42_s28 }
  0x10   :  { %s324_s29 = scalar_lea.vmem %s20_s26, 128  ;;  %p329_p6 = scmp.lt.s32.totalorder %s20_s26, %s20_s26 }
  0x11   :  { %p325_p5 = scmp.ne.s32.totalorder %s20_s26, %s324_s29  ;;  %p330_p7 = scmp.lt.s32.totalorder %s324_s29, %s324_s29 }
  0x13   :  { %p331_p8 = por %p330_p7, %p329_p6 }
  0x15   :  { %p332_p9 = pnand %p331_p8, %p325_p5 }
  0x17   :  { %335 = shalt.err (!%p332_p9)
}
  0x18   :  { %22 = dma.hbm_to_vmem [thread:$0]  %s438_s0, 128, %s20_s26, [#allocation3]  }
  0x19   :  { %s344_s7 = scalar_lea.vmem %s43_s28, 512  ;;  %p349_p11 = scmp.lt.s32.totalorder %s43_s28, %s43_s28 }
  0x1a   :  { %p345_p10 = scmp.ne.s32.totalorder %s43_s28, %s344_s7  ;;  %p350_p12 = scmp.lt.s32.totalorder %s344_s7, %s344_s7 }
  0x1c   :  { %p351_p13 = por %p350_p12, %p349_p11 }
  0x1e   :  { %p352_p0 = pnand %p351_p13, %p345_p10 }
  0x20   :  { %355 = shalt.err (!%p352_p0)
}
  0x21   :  { %48 = dma.hbm_to_vmem [thread:$0]  %s441_s3, 512, %s43_s28, [#allocation6], %s383_s21, %s383_s21, %s384_s22  }
  0x22   :  { %376 = dma.done.wait [#allocation3], 128  }
  0x23   :  { %377 = vsyncadd [#allocation3], 4294967168 }
  0x24   :  { %378 = dma.done.wait [#allocation6], 768  }
  0x25   :  { %379 = vsyncadd [#allocation6], 4294966528  ;;  %v387_v0 = vmov 0.0   ;;  %vm388_vm0 = vmmov 0   ;;  %v62_v1 = vld [vmem:[#allocation5 + $0x8] sm:$0xff]  ;;  %v61_v2 = vld [vmem:[#allocation5] sm:$0xff] }
  0x26   :  { %266 = vmatprep.subr.mxu0 %v387_v0  ;;  %270 = vmatprep.mubr.msk.f32.mxu0 %vm388_vm0, %v387_v0  ;;  %v60_v3 = vld [vmem:[#allocation2] sm:$0xff]  ;;  %vm70_vm1 = vcmask 130048   ;;  %v148_v4 = vld [vmem:[#allocation7 + $0x18] sm:$0xff]  ;;  %v147_v5 = vld [vmem:[#allocation7 + $0x10] sm:$0xff]  ;;  %vm156_vm2 = vcmask 261120   ;;  %s389_s11 = smov [#allocation8]  }
  0x27   :  { %273 = vmatprep.subr.mxu1 %v387_v0  ;;  %281 = vmatprep.mubr.msk.f32.mxu1 %vm388_vm0, %v387_v0  ;;  %v146_v6 = vld [vmem:[#allocation7 + $0x8] sm:$0xff]  ;;  %v145_v7 = vld [vmem:[#allocation7] sm:$0xff] }
  0x28   :  { %267 = vmatpush3.msra.mxu0 %v62_v1  ;;  %274 = vmatpush3.msra.mxu1 %v148_v4  ;;  %v253_v8 = vld [vmem:[%s440_s2] ss:$0 sm:$0xff]  ;;  %s243_s2 = sshll.u32 %s389_s11, 4  ;;  %s244_s2 = int_to_ptr.vmem [resolvable:$true] %s243_s2 }
  0x29   :  { %268 = vmatprep.subr.mxu0 %v387_v0  ;;  %275 = vmatprep.subr.mxu1 %v387_v0  ;;  %v255_v13 = vld [vmem:[%s442_s4] ss:$0 sm:$0xff]  ;;  %s356_s12 = scalar_lea.vmem %s244_s2, 128  ;;  %p361_p2 = scmp.lt.s32.totalorder %s244_s2, %s244_s2 }
  0x2a   :  { %269 = vmatpush3.msra.mxu0 %v61_v2  ;;  %276 = vmatpush3.msra.mxu1 %v147_v5  ;;  %p357_p1 = scmp.ne.s32.totalorder %s244_s2, %s356_s12  ;;  %p362_p3 = scmp.lt.s32.totalorder %s356_s12, %s356_s12 }
  0x2b   :  { %271 = vmatmul.mubr.msk.f32.vlgmr.msra.gmra.mxu0 %vm70_vm1, %v60_v3  ;;  %277 = vmatprep.subr.mxu1 %v387_v0 }
  0x2c   :  { %278 = vmatpush3.msra.mxu1 %v146_v6  ;;  %p363_p4 = por %p362_p3, %p361_p2 }
  0x2d   :  { %279 = vmatprep.subr.mxu1 %v387_v0 }
  0x2e   :  { %280 = vmatpush3.msra.mxu1 %v145_v7  ;;  %p364_p5 = pnand %p363_p4, %p357_p1 }
  0xeb   :  { %v140_v9 = vpop.f32.mrf.mxu0 }
  0xec   :  { %v141_v10 = vadd.f32 %v253_v8, %v140_v9 }
  0xed   :  { %v272_v11 = vpop.f32.mrf.mxu0 }
  0xee   :  { %v144_v12 = vmax.f32 %v141_v10, 0.0 }
  0xf0   :  { %282 = vmatmul.mubr.msk.f32.vlgmr.msra.gmra.mxu1 %vm156_vm2, %v144_v12 }
 0x1b0   :  { %v226_v14 = vpop.f32.mrf.mxu1 }
 0x1b1   :  { %v227_v15 = vadd.f32 %v255_v13, %v226_v14 }
 0x1b2   :  { %v283_v16 = vpop.f32.mrf.mxu1 }
 0x1b3   :  { %v257_v17 = vmul.f32 -1.442695, %v227_v15 }
 0x1b5   :  { %292 = vpow2.f32 %v257_v17 }
 0x1c2   :  { %v293_v18 = vpop.eup %292 }
 0x1c3   :  { %v233_v19 = vadd.f32 1.0, %v293_v18 }
 0x1c5   :  { %294 = vrcp.f32 %v233_v19 }
 0x1d2   :  { %v295_v20 = vpop.eup %294 }
 0x1d3   :  { %236 = vst [vmem:[#allocation8] sm:$0xff] %v295_v20 }
 0x1d4   :  { %367 = shalt.err (!%p364_p5)
}
 0x1d5   :  { %246 = dma.vmem_to_hbm [thread:$0]  %s244_s2, 128, %s443_s5, [#allocation4]  }
 0x1d6   :  { %380 = dma.done.wait [#allocation4], 128  }
 0x1d7   :  { %381 = vsyncadd [#allocation4], 4294967168 }
 0x1d8   :  { %250 = vsyncpa [#allocation3], 1 }
 0x1d9   :  { %251 = vsyncpa [#allocation6], 1 }
 0x1da   :  { %252 = vsyncpa [#allocation4], 1 }

</bundles_post_ra>
